<compile_context>
chip_gen: v7x
topology: tpu7x:2x2x1
jax: 0.10.0
libtpu: 0.0.40
codegen_flags: <defaults>
</compile_context>

<pallas_src>
import functools

import jax
import jax.numpy as jnp
from jax.experimental import pallas as pl
from jax.experimental.pallas import tpu as pltpu


def learn_vector_kernel(x_ref, w1_ref, s1_ref, b1_ref, w2_ref, s2_ref, b2_ref,
                        out_ref):
    # x_ref  : (TM, Cin)        flattened activation rows (one pixel per row)
    # w1_ref : (Cin, P)         conv1 1x1 weight, channel-matmul form
    # w2_ref : (P, P)           conv2 1x1 weight
    # s*,b*  : (1, P)           folded BatchNorm scale / bias
    # out_ref: (TM, Cin + P)    concat([x, relu(bn2(conv2(relu(bn1(conv1(x))))))])
    x = x_ref[...]

    # conv1 (1x1) -> bn1 -> relu : single MXU matmul + VPU epilogue
    h1 = jnp.dot(x, w1_ref[...], preferred_element_type=jnp.float32)
    h1 = jnp.maximum(h1 * s1_ref[...] + b1_ref[...], 0.0)

    # conv2 (1x1) -> bn2 -> relu
    h2 = jnp.dot(h1, w2_ref[...], preferred_element_type=jnp.float32)
    h2 = jnp.maximum(h2 * s2_ref[...] + b2_ref[...], 0.0)

    # channel concat: [x, h2]  -> one lane-dense (TM, Cin+P) store
    out_ref[...] = jnp.concatenate([x, h2], axis=-1)


def _pick_row_tile(m):
    # Largest sublane-aligned tile that divides M and leaves >= 2 grid blocks
    # (keeps both v7x TensorCores busy).  Falls back to a single block.
    for tile in (1024, 512, 256, 128, 64, 32, 16, 8):
        if m % tile == 0 and m // tile >= 2:
            return tile
    return m


@jax.jit
def learn_vector_forward(x_nchw, w1, scale1, bias1, w2, scale2, bias2):
    """x_nchw: (N, Cin, H, W) f32.  Returns (N, Cin + planes, H, W) f32."""
    N, Cin, H, W = x_nchw.shape
    P = w1.shape[-1]
    M = N * H * W

    # NCHW -> NHWC -> (M, Cin): channels land on the lane axis.
    x_flat = jnp.transpose(x_nchw, (0, 2, 3, 1)).reshape(M, Cin)
    x_flat = x_flat.astype(jnp.float32)

    s1 = scale1.reshape(1, P).astype(jnp.float32)
    b1 = bias1.reshape(1, P).astype(jnp.float32)
    s2 = scale2.reshape(1, P).astype(jnp.float32)
    b2 = bias2.reshape(1, P).astype(jnp.float32)

    tm = _pick_row_tile(M)
    grid = (M // tm,)

    out_flat = pl.pallas_call(
        learn_vector_kernel,
        out_shape=jax.ShapeDtypeStruct((M, Cin + P), jnp.float32),
        grid_spec=pltpu.PrefetchScalarGridSpec(
            num_scalar_prefetch=0,
            grid=grid,
            in_specs=[
                pl.BlockSpec((tm, Cin), lambda i: (i, 0)),
                pl.BlockSpec((Cin, P), lambda i: (0, 0)),
                pl.BlockSpec((1, P), lambda i: (0, 0)),
                pl.BlockSpec((1, P), lambda i: (0, 0)),
                pl.BlockSpec((P, P), lambda i: (0, 0)),
                pl.BlockSpec((1, P), lambda i: (0, 0)),
                pl.BlockSpec((1, P), lambda i: (0, 0)),
            ],
            out_specs=pl.BlockSpec((tm, Cin + P), lambda i: (i, 0)),
        ),
        compiler_params=pltpu.CompilerParams(
            dimension_semantics=("parallel",)),
    )(x_flat, w1.astype(jnp.float32), s1, b1, w2.astype(jnp.float32), s2, b2)

    # (M, Cin+P) -> (N, H, W, Cin+P) -> NCHW
    out = out_flat.reshape(N, H, W, Cin + P)
    return jnp.transpose(out, (0, 3, 1, 2))


def reference_forward(x_nchw, w1, scale1, bias1, w2, scale2, bias2):
    """Pure-JAX reference of LearnVector.forward (1x1 conv == channel matmul)."""
    x = jnp.transpose(x_nchw, (0, 2, 3, 1))                        # NHWC
    h = jnp.einsum('nhwc,cp->nhwp', x, w1) * scale1 + bias1
    h = jnp.maximum(h, 0.0)
    h = jnp.einsum('nhwp,pq->nhwq', h, w2) * scale2 + bias2
    h = jnp.maximum(h, 0.0)
    out = jnp.concatenate([x, h], axis=-1)                         # cat(dim=channels)
    return jnp.transpose(out, (0, 3, 1, 2))                        # back to NCHW


def fold_bn(gamma, beta, mean, var, eps=1e-5):
    scale = gamma / jnp.sqrt(var + eps)
    bias = beta - mean * scale
    return scale, bias


if __name__ == "__main__":
    # Deterministic small config.  in_planes = planes = 64 so the concatenated
    # channel axis is exactly 128 lanes (fully lane-dense output stores).
    N, C, H, W = 2, 64, 16, 16
    planes = 64

    key = jax.random.PRNGKey(0)
    keys = jax.random.split(key, 11)

    x = jax.random.normal(keys[0], (N, C, H, W), jnp.float32)

    # 1x1 conv weights in channel-matmul form (Cin, P) / (P, P), bias=False.
    w1 = jax.random.normal(keys[1], (C, planes), jnp.float32) / jnp.sqrt(float(C))
    w2 = jax.random.normal(keys[2], (planes, planes), jnp.float32) / jnp.sqrt(float(planes))

    # BatchNorm parameters (inference semantics, running stats folded).
    g1 = 0.5 + jax.random.uniform(keys[3], (planes,), jnp.float32)
    be1 = 0.1 * jax.random.normal(keys[4], (planes,), jnp.float32)
    m1 = 0.1 * jax.random.normal(keys[5], (planes,), jnp.float32)
    v1 = 0.5 + jax.random.uniform(keys[6], (planes,), jnp.float32)
    g2 = 0.5 + jax.random.uniform(keys[7], (planes,), jnp.float32)
    be2 = 0.1 * jax.random.normal(keys[8], (planes,), jnp.float32)
    m2 = 0.1 * jax.random.normal(keys[9], (planes,), jnp.float32)
    v2 = 0.5 + jax.random.uniform(keys[10], (planes,), jnp.float32)

    scale1, bias1 = fold_bn(g1, be1, m1, v1)
    scale2, bias2 = fold_bn(g2, be2, m2, v2)

    out = learn_vector_forward(x, w1, scale1, bias1, w2, scale2, bias2)
    out = jax.block_until_ready(out)

    ref = reference_forward(x, w1, scale1, bias1, w2, scale2, bias2)
    assert out.shape == (N, C + planes, H, W), out.shape
    assert jnp.allclose(out, ref, rtol=1e-3, atol=1e-3), \
        f"max abs diff {jnp.max(jnp.abs(out - ref))}"

    print("KERNEL_OK")
</pallas_src>

<mosaic_0001>
module attributes {stable_mosaic.version = 11 : i64} {
  func.func @learn_vector_kernel(%arg0: i32, %arg1: memref<256x64xf32, #tpu.memory_space<vmem>>, %arg2: memref<64x64xf32, #tpu.memory_space<vmem>>, %arg3: memref<1x64xf32, #tpu.memory_space<vmem>>, %arg4: memref<1x64xf32, #tpu.memory_space<vmem>>, %arg5: memref<64x64xf32, #tpu.memory_space<vmem>>, %arg6: memref<1x64xf32, #tpu.memory_space<vmem>>, %arg7: memref<1x64xf32, #tpu.memory_space<vmem>>, %arg8: memref<256x128xf32, #tpu.memory_space<vmem>>) attributes {dimension_semantics = [#tpu.dimension_semantics<parallel>], iteration_bounds = array<i64: 2>, scalar_prefetch = 0 : i64, scratch_operands = 0 : i64, tpu.core_type = #tpu.core_type<tc>, window_params = [{transform_indices = @transform_0, window_bounds = array<i64: 256, 64>}, {pipeline_mode = #tpu.pipeline_mode<synchronous>, transform_indices = @transform_1, window_bounds = array<i64: 64, 64>}, {pipeline_mode = #tpu.pipeline_mode<synchronous>, transform_indices = @transform_2, window_bounds = array<i64: 1, 64>}, {pipeline_mode = #tpu.pipeline_mode<synchronous>, transform_indices = @transform_3, window_bounds = array<i64: 1, 64>}, {pipeline_mode = #tpu.pipeline_mode<synchronous>, transform_indices = @transform_4, window_bounds = array<i64: 64, 64>}, {pipeline_mode = #tpu.pipeline_mode<synchronous>, transform_indices = @transform_5, window_bounds = array<i64: 1, 64>}, {pipeline_mode = #tpu.pipeline_mode<synchronous>, transform_indices = @transform_6, window_bounds = array<i64: 1, 64>}, {transform_indices = @transform_7, window_bounds = array<i64: 256, 128>}]} {
    %c0 = arith.constant 0 : index
    %c0_0 = arith.constant 0 : index
    %0 = vector.load %arg1[%c0, %c0_0] : memref<256x64xf32, #tpu.memory_space<vmem>>, vector<256x64xf32>
    %c0_1 = arith.constant 0 : index
    %c0_2 = arith.constant 0 : index
    %1 = vector.load %arg2[%c0_1, %c0_2] : memref<64x64xf32, #tpu.memory_space<vmem>>, vector<64x64xf32>
    %cst = arith.constant dense<0.000000e+00> : vector<256x64xf32>
    %2 = tpu.matmul %0, %1, %cst {dimension_numbers = #tpu.dot_dimension_numbers<[1], [0], [0], [1], [0, 0, 1, 1], [], []>} : vector<256x64xf32>, vector<64x64xf32>, vector<256x64xf32> -> vector<256x64xf32>
    %c0_3 = arith.constant 0 : index
    %c0_4 = arith.constant 0 : index
    %3 = vector.load %arg3[%c0_3, %c0_4] : memref<1x64xf32, #tpu.memory_space<vmem>>, vector<1x64xf32>
    %4 = vector.broadcast %3 : vector<1x64xf32> to vector<256x64xf32>
    %5 = arith.mulf %2, %4 : vector<256x64xf32>
    %c0_5 = arith.constant 0 : index
    %c0_6 = arith.constant 0 : index
    %6 = vector.load %arg4[%c0_5, %c0_6] : memref<1x64xf32, #tpu.memory_space<vmem>>, vector<1x64xf32>
    %7 = vector.broadcast %6 : vector<1x64xf32> to vector<256x64xf32>
    %8 = arith.addf %5, %7 : vector<256x64xf32>
    %cst_7 = arith.constant 0.000000e+00 : f32
    %9 = vector.broadcast %cst_7 : f32 to vector<256x64xf32>
    %10 = arith.maximumf %8, %9 : vector<256x64xf32>
    %c0_8 = arith.constant 0 : index
    %c0_9 = arith.constant 0 : index
    %11 = vector.load %arg5[%c0_8, %c0_9] : memref<64x64xf32, #tpu.memory_space<vmem>>, vector<64x64xf32>
    %cst_10 = arith.constant dense<0.000000e+00> : vector<256x64xf32>
    %12 = tpu.matmul %10, %11, %cst_10 {dimension_numbers = #tpu.dot_dimension_numbers<[1], [0], [0], [1], [0, 0, 1, 1], [], []>} : vector<256x64xf32>, vector<64x64xf32>, vector<256x64xf32> -> vector<256x64xf32>
    %c0_11 = arith.constant 0 : index
    %c0_12 = arith.constant 0 : index
    %13 = vector.load %arg6[%c0_11, %c0_12] : memref<1x64xf32, #tpu.memory_space<vmem>>, vector<1x64xf32>
    %14 = vector.broadcast %13 : vector<1x64xf32> to vector<256x64xf32>
    %15 = arith.mulf %12, %14 : vector<256x64xf32>
    %c0_13 = arith.constant 0 : index
    %c0_14 = arith.constant 0 : index
    %16 = vector.load %arg7[%c0_13, %c0_14] : memref<1x64xf32, #tpu.memory_space<vmem>>, vector<1x64xf32>
    %17 = vector.broadcast %16 : vector<1x64xf32> to vector<256x64xf32>
    %18 = arith.addf %15, %17 : vector<256x64xf32>
    %cst_15 = arith.constant 0.000000e+00 : f32
    %19 = vector.broadcast %cst_15 : f32 to vector<256x64xf32>
    %20 = arith.maximumf %18, %19 : vector<256x64xf32>
    %21 = tpu.concatenate %0, %20 in 1 : vector<256x64xf32>, vector<256x64xf32> -> vector<256x128xf32>
    %c0_16 = arith.constant 0 : index
    %c0_17 = arith.constant 0 : index
    %22 = vector.load %arg8[%c0_16, %c0_17] : memref<256x128xf32, #tpu.memory_space<vmem>>, vector<256x128xf32>
    tpu.vector_store %arg8[%c0_16, %c0_17], %21 {strides = array<i32>} : memref<256x128xf32, #tpu.memory_space<vmem>>, vector<256x128xf32>,
    return
  }
  func.func @transform_0(%arg0: i32) -> (i32, i32) {
    %c0_i32 = arith.constant 0 : i32
    %c0_i32_0 = arith.constant 0 : i32
    return %arg0, %c0_i32 : i32, i32
  }
  func.func @transform_1(%arg0: i32) -> (i32, i32) {
    %c0_i32 = arith.constant 0 : i32
    %c0_i32_0 = arith.constant 0 : i32
    %c0_i32_1 = arith.constant 0 : i32
    return %c0_i32, %c0_i32_0 : i32, i32
  }
  func.func @transform_2(%arg0: i32) -> (i32, i32) {
    %c0_i32 = arith.constant 0 : i32
    %c0_i32_0 = arith.constant 0 : i32
    %c0_i32_1 = arith.constant 0 : i32
    return %c0_i32, %c0_i32_0 : i32, i32
  }
  func.func @transform_3(%arg0: i32) -> (i32, i32) {
    %c0_i32 = arith.constant 0 : i32
    %c0_i32_0 = arith.constant 0 : i32
    %c0_i32_1 = arith.constant 0 : i32
    return %c0_i32, %c0_i32_0 : i32, i32
  }
  func.func @transform_4(%arg0: i32) -> (i32, i32) {
    %c0_i32 = arith.constant 0 : i32
    %c0_i32_0 = arith.constant 0 : i32
    %c0_i32_1 = arith.constant 0 : i32
    return %c0_i32, %c0_i32_0 : i32, i32
  }
  func.func @transform_5(%arg0: i32) -> (i32, i32) {
    %c0_i32 = arith.constant 0 : i32
    %c0_i32_0 = arith.constant 0 : i32
    %c0_i32_1 = arith.constant 0 : i32
    return %c0_i32, %c0_i32_0 : i32, i32
  }
  func.func @transform_6(%arg0: i32) -> (i32, i32) {
    %c0_i32 = arith.constant 0 : i32
    %c0_i32_0 = arith.constant 0 : i32
    %c0_i32_1 = arith.constant 0 : i32
    return %c0_i32, %c0_i32_0 : i32, i32
  }
  func.func @transform_7(%arg0: i32) -> (i32, i32) {
    %c0_i32 = arith.constant 0 : i32
    %c0_i32_0 = arith.constant 0 : i32
    return %arg0, %c0_i32 : i32, i32
  }
}

</mosaic_0001>

<bundles_post_ra>
// kernel: learn_vector_forward.1
= control target key start
LH: loop header
LB: loop body
LE: loop exit
PB: predicated region body
PF: predicated region fallthrough
CT: control target
= control target key end

     0   :  { %12 = vsyncpa [#allocation3], 0  ;;  %s2864_s0 = inlined_call_operand.hbm [shape: f32[512,64], index: 0, kind: input, shape index: {}]   ;;  %s2865_s1 = inlined_call_operand.hbm [shape: f32[64,64], index: 1, kind: input, shape index: {}]   ;;  %s2866_s2 = inlined_call_operand.vmem [shape: f32[1,64], index: 2, kind: input, shape index: {}]   ;;  %s2867_s3 = inlined_call_operand.vmem [shape: f32[1,64], index: 3, kind: input, shape index: {}]   ;;  %s2868_s4 = inlined_call_operand.hbm [shape: f32[64,64], index: 4, kind: input, shape index: {}]   ;;  %s2869_s5 = inlined_call_operand.vmem [shape: f32[1,64], index: 5, kind: input, shape index: {}]   ;;  %s2870_s6 = inlined_call_operand.vmem [shape: f32[1,64], index: 6, kind: input, shape index: {}]   ;;  %s2871_s7 = inlined_call_operand.hbm [shape: f32[512,128], index: 7, kind: output, shape index: {}]  }
   0x1   :  { %14 = vsyncpa [#allocation3 + $0x1], 0 }
   0x2   :  { %15 = vsyncpa [#allocation6], 0 }
   0x3   :  { %16 = vsyncpa [#allocation4], 0 }
   0x4   :  { %18 = vsyncpa [#allocation4 + $0x1], 0  ;;  %s2144_s24 = smov 0   ;;  %s2146_s25 = smov 0  }
   0x5   :  { %s2148_s26 = smov 0   ;;  %s2150_s27 = smov 0  }
   0x6 LB: > { %s2165_s28 = sadd.s32 4294967295, %s2093_s27   ;;  %s1537_s29 = sadd.s32 4294967294, %s2093_s27   ;;  %s2093_s27 = sphi %s2150_s27, %s2893_s27   ;;  %s2089_s26 = sphi %s2148_s26, %s2892_s26   ;;  %s2085_s25 = sphi %s2146_s25, %s2891_s25   ;;  %s2081_s24 = sphi %s2144_s24, %s2890_s24  }
   0x7   : > { %p44_p0 = scmp.ne.s32.totalorder %s2085_s25, %s2081_s24  ;;  %p2872_p1 = scmp.eq.s32.totalorder %s2165_s28, 0 }
   0x8   : > { %p200_p3 = scmp.eq.s32.totalorder %s1537_s29, 1  ;;  %p1538_p5 = scmp.ge.s32.totalorder %s2093_s27, 1 }
   0x9   : > { %p2174_p4 = por %p2872_p1, %p44_p0  ;;  %p207_p7 = scmp.lt.s32.totalorder %s2093_s27, 3 }
   0xa   : > { %p2179_p6 = por %p200_p3, %p44_p0  ;;  %s2095_s10 = smov [#allocation5]  }
   0xb   : > { %s2876_s30 = scalar_select %p2174_p4, 1, 0 }
   0xc   : > { %s2877_s8 = scalar_select %p2179_p6, 1, 0 }
   0xd   : > { %p2184_p8 = pnand %p1538_p5, %p207_p7  ;;  %s219_s11 = sshll.u32 %s2095_s10, 4  ;;  %s2188_s11 = int_to_ptr.vmem [resolvable:$true] %s219_s11 }
   0xe   : > { %s2096_s13 = smov [#allocation7]   ;;  %s1937_s17 = scalar_lea.hbm %s2865_s1, 1024 }
   0xf   : > { %p1877_p9 = pneg %p2184_p8  ;;  %s238_s14 = sshll.u32 %s2096_s13, 4  ;;  %s2199_s14 = int_to_ptr.vmem [resolvable:$true] %s238_s14 }
  0x10   : > { %p1938_p12 = scmp.ne.s32.totalorder %s2865_s1, %s1937_s17  ;;  %p1944_p5 = scmp.lt.u32.totalorder %s1937_s17, %s2865_s1 }
  0x11   : > { %p2195_p11 = pnand %p1877_p9, %p2872_p1 }
  0x13   : > { %p1939_p13 = pneg %p2195_p11 }
  0x15   : > { %p1940_p0 = pnand %p1939_p13, %p1938_p12 }
  0x17   : > { %p1941_p3 = pneg %p1940_p0 }
  0x19   : > { %p1946_p7 = pnand %p1944_p5, %p1941_p3 }
  0x1b   : > { %1949 = shalt.err (!%p1946_p7)
}
  0x1c   : > { %s1950_s22 = scalar_lea.vmem %s2188_s11, 1024  ;;  %p1958_p2 = scmp.lt.s32.totalorder %s2188_s11, %s2188_s11 }
  0x1d   : > { %p1951_p9 = scmp.ne.s32.totalorder %s2188_s11, %s1950_s22  ;;  %p1959_p12 = scmp.lt.s32.totalorder %s1950_s22, %s1950_s22 }
  0x1f   : > { %p1953_p10 = pnand %p1951_p9, %p1939_p13  ;;  %p1960_p0 = por %p1959_p12, %p1958_p2 }
  0x21   : > { %p1954_p1 = pneg %p1953_p10 }
  0x23   : > { %p1961_p6 = pnand %p1960_p0, %p1954_p1 }
  0x25   : > { %1964 = shalt.err (!%p1961_p6)
}
  0x26   : > { %s2873_s23 = smov 128   ;;  %s2098_s29 = smov 8  }
  0x27   : > { %1880 = dma.hbm_to_vmem [thread:$0]  (!%p2195_p11), %s2865_s1, 1024, %s2188_s11, [#allocation6], %s2873_s23, %s2873_s23, %s2098_s29  }
  0x28   : > { %s1965_s17 = scalar_lea.hbm %s2868_s4, 1024 }
  0x29   : > { %p1966_p1 = scmp.ne.s32.totalorder %s2868_s4, %s1965_s17  ;;  %p1972_p10 = scmp.lt.u32.totalorder %s1965_s17, %s2868_s4 }
  0x2b   : > { %p1968_p2 = pnand %p1966_p1, %p1939_p13 }
  0x2d   : > { %p1969_p6 = pneg %p1968_p2 }
  0x2f   : > { %p1974_p3 = pnand %p1972_p10, %p1969_p6 }
  0x31   : > { %1977 = shalt.err (!%p1974_p3)
}
  0x32   : > { %s1978_s11 = scalar_lea.vmem %s2199_s14, 1024  ;;  %p1986_p12 = scmp.lt.s32.totalorder %s2199_s14, %s2199_s14 }
  0x33   : > { %p1979_p5 = scmp.ne.s32.totalorder %s2199_s14, %s1978_s11  ;;  %p1987_p0 = scmp.lt.s32.totalorder %s1978_s11, %s1978_s11 }
  0x35   : > { %p1981_p7 = pnand %p1979_p5, %p1939_p13  ;;  %p1988_p1 = por %p1987_p0, %p1986_p12 }
  0x37   : > { %p1982_p9 = pneg %p1981_p7 }
  0x39   : > { %p1989_p2 = pnand %p1988_p1, %p1982_p9 }
  0x3b   : > { %1992 = shalt.err (!%p1989_p2)
}
  0x3c   : > { %1883 = dma.hbm_to_vmem [thread:$0]  (!%p2195_p11), %s2868_s4, 1024, %s2199_s14, [#allocation6], %s2873_s23, %s2873_s23, %s2098_s29  }
  0x3d   : > { %s2260_s12 = sadd.s32 1, %s2093_s27   ;;  %s31_s13 = sadd.s32 1, %s2089_s26 }
  0x3e   : > { %s28_s15 = ssub.s32 %s2093_s27, %s2260_s12  ;;  %p38_p13 = scmp.ne.s32.totalorder %s2089_s26, %s2085_s25 }
  0x3f   : > { %p29_p6 = scmp.eq.s32.totalorder %s28_s15, 0  ;;  %p39_p10 = scmp.eq.s32.totalorder %s2093_s27, 0 }
  0x40   : > { %p2880_p3 = scmp.eq.s32.totalorder %s2165_s28, 1  ;;  %p1894_p7 = scmp.lt.s32.totalorder %s2093_s27, 2 }
  0x41   : > { %s2276_s17 = scalar_select %p29_p6, %s2089_s26, %s31_s13  }
  0x42   : > { %p2270_p5 = por %p2880_p3, %p38_p13  ;;  %p40_p9 = por %p39_p10, %p38_p13 }
  0x43   : > { %s258_s18 = sand.u32 1, %s2089_s26   ;;  %s1623_s14 = sshll.u32 %s2093_s27, 12 }
  0x44   : > { %s2881_s16 = scalar_select %p2270_p5, 1, 0 }
  0x45   : > { %s1542_s19 = sshll.u32 %s258_s18, 8  ;;  %s2283_s11 = scalar_lea.hbm %s2864_s0, %s1623_s14 }
  0x46   : > { %s262_s22 = scalar_lea.vmem [#allocation2], %s1542_s19  ;;  %p2287_p11 = pnand %p1894_p7, %p40_p9 }
  0x47   : > { %s269_s10 = sshll.u32 %s262_s22, 4  ;;  %s2291_s15 = scalar_lea.sflag [#allocation3], %s258_s18  ;;  %s2285_s10 = int_to_ptr.vmem [resolvable:$true] %s269_s10 }
  0x48   : > { %s1993_s23 = scalar_lea.hbm %s2283_s11, 4096  ;;  %p1995_p0 = pneg %p2287_p11 }
  0x49   : > { %p1994_p12 = scmp.ne.s32.totalorder %s2283_s11, %s1993_s23  ;;  %s1998_s20 = scalar_lea.hbm %s2864_s0, 8192 }
  0x4a   : > { %p1999_p13 = scmp.lt.u32.totalorder %s2283_s11, %s2864_s0  ;;  %p2000_p6 = scmp.lt.u32.totalorder %s1998_s20, %s1993_s23 }
  0x4b   : > { %p1996_p1 = pnand %p1995_p0, %p1994_p12  ;;  %p2002_p3 = scmp.lt.u32.totalorder %s1993_s23, %s2283_s11 }
  0x4c   : > { %p2001_p10 = por %p2000_p6, %p1999_p13 }
  0x4d   : > { %p1997_p2 = pneg %p1996_p1 }
  0x4e   : > { %p2003_p7 = por %p2002_p3, %p2001_p10 }
  0x50   : > { %p2004_p9 = pnand %p2003_p7, %p1997_p2 }
  0x52   : > { %2007 = shalt.err (!%p2004_p9)
}
  0x53   : > { %s2008_s18 = scalar_lea.vmem %s2285_s10, 4096  ;;  %s2099_s19 = smov [#allocation2]  }
  0x54   : > { %p2009_p12 = scmp.ne.s32.totalorder %s2285_s10, %s2008_s18  ;;  %s2013_s14 = sshll.u32 %s2099_s19, 4  ;;  %s2014_s14 = int_to_ptr.vmem [resolvable:$false] %s2013_s14 }
  0x55   : > { %s2015_s21 = scalar_lea.vmem %s2014_s14, 8192  ;;  %p2016_p4 = scmp.lt.s32.totalorder %s2285_s10, %s2014_s14 }
  0x56   : > { %p2011_p1 = pnand %p2009_p12, %p1995_p0  ;;  %p2017_p13 = scmp.lt.s32.totalorder %s2015_s21, %s2008_s18 }
  0x58   : > { %p2012_p5 = pneg %p2011_p1  ;;  %p2018_p6 = por %p2017_p13, %p2016_p4 }
  0x5a   : > { %p2019_p10 = pnand %p2018_p6, %p2012_p5 }
  0x5c   : > { %2022 = shalt.err (!%p2019_p10)
}
  0x5d   : > { %s2883_s23 = smov 128   ;;  %281 = sbr.rel (%p2184_p8) target bundleno = 756 (0x2f4), region = 48 }
  0x5e   : > { %1887 = dma.hbm_to_vmem [thread:$0]  (!%p2287_p11), %s2283_s11, 4096, %s2285_s10, %s2291_s15, %s2883_s23, %s2883_s23, %s2098_s29  }
  0x5f   : > { %s2325_s20 = sand.u32 (!%p2184_p8), 1, %s2085_s25   ;;  %p2884_p4 = scmp.ne.s32.totalorder (!%p2184_p8), %s2876_s30, 0 }
  0x60   : > { %s1546_s22 = sshll.u32 (!%p2184_p8), %s2325_s20, 8  ;;  %s284_s18 = scalar_lea.sflag (!%p2184_p8), [#allocation3], %s2325_s20 }
  0x61   : > { %s2331_s13 = scalar_lea.vmem (!%p2184_p8), [#allocation2], %s1546_s22 }
  0x64   : > { %2068 = dma.done.wait (%p2884_p4), %s284_s18, 4096  }
  0x65   : > { %2070 = vsyncadd (%p2884_p4), %s284_s18, 4294963200  ;;  %p2885_p5 = scmp.eq.s32.totalorder %s2165_s28, 0 }
  0x67   : > { %2072 = dma.done.wait (%p2885_p5), [#allocation6], 2048   ;;  %p2886_p8 = pmov %p2885_p5 }
  0x68   : > { %v360_v0 = vld [vmem:[#allocation5] sm:$0xff]  ;;  %v361_v1 = vld [vmem:[#allocation5 + $0x8] sm:$0xff]  ;;  %v362_v2 = vld [vmem:[#allocation5 + $0x10] sm:$0xff]  ;;  %vm368_vm0 = vcmask 523264   ;;  %s2100_s21 = smov 64   ;;  %s2717_s23 = scalar_lea.vmem [#allocation8], %s1546_s22 }
  0x69   : > { %2074 = vsyncadd (%p2886_p8), [#allocation6], 4294965248  ;;  %v1833_v3 = vpack.c.bf16 %v361_v1, %v360_v0  ;;  %v363_v4 = vld [vmem:[#allocation5 + $0x18] sm:$0xff]  ;;  %v364_v6 = vld [vmem:[#allocation5 + $0x20] sm:$0xff]  ;;  %s1624_s22 = sshll.u32 %s2165_s28, 12  ;;  %s1445_s18 = sshll.u32 %s2717_s23, 4  ;;  %s2817_s18 = int_to_ptr.vmem [resolvable:$true] %s1445_s18 }
  0x6a   : > { %v1837_v5 = vpack.c.bf16 %v363_v4, %v362_v2  ;;  %v365_v7 = vld [vmem:[#allocation5 + $0x28] sm:$0xff]  ;;  %v2342_v8 = vld [vmem:[%s2331_s13] sm:$0xff]  ;;  %v366_v10 = vld [vmem:[#allocation5 + $0x30] sm:$0xff]  ;;  %s2815_s9 = scalar_lea.hbm %s2871_s7, %s1624_s22  ;;  %s1432_s28 = scalar_lea.sflag [#allocation4], %s2325_s20 }
  0x6b   : > { %1834 = vmatprep.subr.bf16.mxu0 %v1833_v3  ;;  %1721 = vmatprep.mubr.msk.f32.mxu0 %vm368_vm0, %v2342_v8  ;;  %v1841_v9 = vpack.c.bf16 %v365_v7, %v364_v6  ;;  %v367_v11 = vld [vmem:[#allocation5 + $0x38] sm:$0xff]  ;;  %v800_v13 = vld [vmem:[#allocation7] sm:$0xff]  ;;  %v801_v14 = vld [vmem:[#allocation7 + $0x8] sm:$0xff]  ;;  %s2023_s29 = scalar_lea.vmem %s2817_s18, 4096  ;;  %p2887_p0 = scmp.ne.s32.totalorder %s2881_s16, 0 }
  0x6c   : > { %1836 = vmatpush3.bf16.msra.mxu0 %v1833_v3  ;;  %v1845_v12 = vpack.c.bf16 %v367_v11, %v366_v10  ;;  %v1849_v15 = vpack.c.bf16 %v801_v14, %v800_v13  ;;  %v802_v16 = vld [vmem:[#allocation7 + $0x10] sm:$0xff]  ;;  %v803_v17 = vld [vmem:[#allocation7 + $0x18] sm:$0xff]  ;;  %v2347_v19 = vld [vmem:[%s2331_s13 + $0x8] sm:$0xff]  ;;  %p2024_p11 = scmp.ne.s32.totalorder %s2817_s18, %s2023_s29  ;;  %s2101_s11 = smov [#allocation8]  }
  0x6d   : > { %1838 = vmatprep.subr.bf16.mxu0 %v1837_v5  ;;  %v1853_v18 = vpack.c.bf16 %v803_v17, %v802_v16  ;;  %v2350_v20 = vld [vmem:[%s2331_s13 + $0x10] sm:$0xff]  ;;  %v2357_v21 = vld [vmem:[%s2331_s13 + $0x18] sm:$0xff]  ;;  %v2360_v22 = vld [vmem:[%s2331_s13 + $0x20] sm:$0xff]  ;;  %s2027_s10 = sshll.u32 %s2101_s11, 4  ;;  %s2028_s10 = int_to_ptr.vmem [resolvable:$false] %s2027_s10 }
  0x6e   : > { %1850 = vmatprep.subr.bf16.mxu1 %v1849_v15  ;;  %v2367_v23 = vld [vmem:[%s2331_s13 + $0x28] sm:$0xff]  ;;  %v2370_v24 = vld [vmem:[%s2331_s13 + $0x30] sm:$0xff]  ;;  %v2377_v25 = vld [vmem:[%s2331_s13 + $0x38] sm:$0xff]  ;;  %p2025_p2 = pnand %p2024_p11, %p2887_p0  ;;  %s2029_s15 = scalar_lea.vmem %s2028_s10, 8192 }
  0x6f   : > { %1852 = vmatpush3.bf16.msra.mxu1 %v1849_v15  ;;  %v2380_v26 = vld [vmem:[%s2331_s13 + $0x40] sm:$0xff]  ;;  %v2387_v27 = vld [vmem:[%s2331_s13 + $0x48] sm:$0xff]  ;;  %v2390_v28 = vld [vmem:[%s2331_s13 + $0x50] sm:$0xff]  ;;  %p2030_p7 = scmp.lt.s32.totalorder %s2817_s18, %s2028_s10  ;;  %p2031_p9 = scmp.lt.s32.totalorder %s2029_s15, %s2023_s29 }
  0x70   : > { %1840 = vmatpush3.bf16.msra.mxu0 %v1837_v5  ;;  %1854 = vmatprep.subr.bf16.mxu1 %v1853_v18  ;;  %v2397_v29 = vld [vmem:[%s2331_s13 + $0x58] sm:$0xff]  ;;  %v2400_v30 = vld [vmem:[%s2331_s13 + $0x60] sm:$0xff]  ;;  %v2407_v31 = vld [vmem:[%s2331_s13 + $0x68] sm:$0xff]  ;;  %p2026_p3 = pneg %p2025_p2 }
  0x71   : > { %1842 = vmatprep.subr.bf16.mxu0 %v1841_v9  ;;  %v2410_v32 = vld [vmem:[%s2331_s13 + $0x70] sm:$0xff]  ;;  %v2417_v33 = vld [vmem:[%s2331_s13 + $0x78] sm:$0xff]  ;;  %v2420_v34 = vld [vmem:[%s2331_s13 + $0x80] sm:$0xff]  ;;  %p2032_p12 = por %p2031_p9, %p2030_p7 }
  0x72   : > { %v2427_v35 = vld [vmem:[%s2331_s13 + $0x88] sm:$0xff]  ;;  %v2430_v36 = vld [vmem:[%s2331_s13 + $0x90] sm:$0xff]  ;;  %v2437_v37 = vld [vmem:[%s2331_s13 + $0x98] sm:$0xff] }
  0x73   : > { %1856 = vmatpush3.bf16.msra.mxu1 %v1853_v18  ;;  %v2440_v38 = vld [vmem:[%s2331_s13 + $0xa0] sm:$0xff]  ;;  %v2447_v39 = vld [vmem:[%s2331_s13 + $0xa8] sm:$0xff]  ;;  %v2450_v40 = vld [vmem:[%s2331_s13 + $0xb0] sm:$0xff]  ;;  %p2033_p1 = pnand %p2032_p12, %p2026_p3 }
  0x74   : > { %1844 = vmatpush3.bf16.msra.mxu0 %v1841_v9  ;;  %v2457_v41 = vld [vmem:[%s2331_s13 + $0xb8] sm:$0xff]  ;;  %v2460_v42 = vld [vmem:[%s2331_s13 + $0xc0] sm:$0xff]  ;;  %v2467_v43 = vld [vmem:[%s2331_s13 + $0xc8] sm:$0xff] }
  0x75   : > { %1846 = vmatprep.subr.bf16.mxu0 %v1845_v12  ;;  %v2470_v44 = vld [vmem:[%s2331_s13 + $0xd0] sm:$0xff]  ;;  %v2477_v45 = vld [vmem:[%s2331_s13 + $0xd8] sm:$0xff]  ;;  %v2480_v46 = vld [vmem:[%s2331_s13 + $0xe0] sm:$0xff] }
  0x76   : > { %v2487_v47 = vld [vmem:[%s2331_s13 + $0xe8] sm:$0xff]  ;;  %v2490_v48 = vld [vmem:[%s2331_s13 + $0xf0] sm:$0xff]  ;;  %v2497_v49 = vld [vmem:[%s2331_s13 + $0xf8] sm:$0xff] }
  0x77   : > { %v804_v50 = vld [vmem:[#allocation7 + $0x20] sm:$0xff]  ;;  %v805_v51 = vld [vmem:[#allocation7 + $0x28] sm:$0xff]  ;;  %v806_v53 = vld [vmem:[#allocation7 + $0x30] sm:$0xff] }
  0x78   : > { %1848 = vmatpush3.bf16.msra.mxu0 %v1845_v12  ;;  %v1857_v52 = vpack.c.bf16 %v805_v51, %v804_v50  ;;  %v807_v54 = vld [vmem:[#allocation7 + $0x38] sm:$0xff]  ;;  %v2504_v56 = vld [vmem:[%s2866_s2] ss:$0 sm:$0xff] }
  0x79   : > { %v1861_v55 = vpack.c.bf16 %v807_v54, %v806_v53  ;;  %v2509_v58 = vld [vmem:[%s2867_s3] ss:$0 sm:$0xff] }
  0x7a   : > { %1858 = vmatprep.subr.bf16.mxu1 %v1857_v52 }
  0x7b   : > { %1722 = vmatmul.mubr.msk.f32.vlgmr.msra.gmra.mrb[0].mxu0 %vm368_vm0, %v2347_v19  ;;  %1860 = vmatpush3.bf16.msra.mxu1 %v1857_v52 }
  0x7c   : > { %1724 = vmatprep.mubr.msk.f32.mxu0 %vm368_vm0, %v2350_v20  ;;  %1862 = vmatprep.subr.bf16.mxu1 %v1861_v55 }
  0x7f   : > { %1725 = vmatmul.mubr.msk.f32.gmra.mrb[2].mxu0 %vm368_vm0, %v2357_v21  ;;  %1864 = vmatpush3.bf16.msra.mxu1 %v1861_v55 }
  0x80   : > { %1727 = vmatprep.mubr.msk.f32.mxu0 %vm368_vm0, %v2360_v22 }
  0x83   : > { %1728 = vmatmul.mubr.msk.f32.gmra.mrb[4].mxu0 %vm368_vm0, %v2367_v23 }
  0x84   : > { %1730 = vmatprep.mubr.msk.f32.mxu0 %vm368_vm0, %v2370_v24 }
  0x87   : > { %1731 = vmatmul.mubr.msk.f32.gmra.mrb[6].mxu0 %vm368_vm0, %v2377_v25 }
  0x88   : > { %1733 = vmatprep.mubr.msk.f32.mxu0 %vm368_vm0, %v2380_v26 }
  0x8b   : > { %1734 = vmatmul.mubr.msk.f32.gmra.mrb[8].mxu0 %vm368_vm0, %v2387_v27 }
  0x8c   : > { %1736 = vmatprep.mubr.msk.f32.mxu0 %vm368_vm0, %v2390_v28 }
  0x8f   : > { %1737 = vmatmul.mubr.msk.f32.gmra.mrb[10].mxu0 %vm368_vm0, %v2397_v29 }
  0x90   : > { %1739 = vmatprep.mubr.msk.f32.mxu0 %vm368_vm0, %v2400_v30 }
  0x93   : > { %1740 = vmatmul.mubr.msk.f32.gmra.mrb[12].mxu0 %vm368_vm0, %v2407_v31 }
  0x94   : > { %1742 = vmatprep.mubr.msk.f32.mxu0 %vm368_vm0, %v2410_v32 }
  0x97   : > { %1743 = vmatmul.mubr.msk.f32.gmra.mrb[14].mxu0 %vm368_vm0, %v2417_v33 }
  0x98   : > { %1745 = vmatprep.mubr.msk.f32.mxu0 %vm368_vm0, %v2420_v34 }
  0x9b   : > { %1746 = vmatmul.mubr.msk.f32.gmra.mrb[16].mxu0 %vm368_vm0, %v2427_v35 }
  0x9c   : > { %1748 = vmatprep.mubr.msk.f32.mxu0 %vm368_vm0, %v2430_v36 }
  0x9f   : > { %1749 = vmatmul.mubr.msk.f32.gmra.mrb[18].mxu0 %vm368_vm0, %v2437_v37 }
  0xa0   : > { %1751 = vmatprep.mubr.msk.f32.mxu0 %vm368_vm0, %v2440_v38 }
  0xa3   : > { %1752 = vmatmul.mubr.msk.f32.gmra.mrb[20].mxu0 %vm368_vm0, %v2447_v39 }
  0xa4   : > { %1754 = vmatprep.mubr.msk.f32.mxu0 %vm368_vm0, %v2450_v40 }
  0xa7   : > { %1755 = vmatmul.mubr.msk.f32.gmra.mrb[22].mxu0 %vm368_vm0, %v2457_v41 }
  0xa8   : > { %1757 = vmatprep.mubr.msk.f32.mxu0 %vm368_vm0, %v2460_v42 }
  0xab   : > { %1758 = vmatmul.mubr.msk.f32.gmra.mrb[24].mxu0 %vm368_vm0, %v2467_v43 }
  0xac   : > { %1760 = vmatprep.mubr.msk.f32.mxu0 %vm368_vm0, %v2470_v44 }
  0xaf   : > { %1761 = vmatmul.mubr.msk.f32.gmra.mrb[26].mxu0 %vm368_vm0, %v2477_v45 }
  0xb0   : > { %1763 = vmatprep.mubr.msk.f32.mxu0 %vm368_vm0, %v2480_v46 }
  0xb3   : > { %1764 = vmatmul.mubr.msk.f32.gmra.mrb[28].mxu0 %vm368_vm0, %v2487_v47 }
  0xb4   : > { %1766 = vmatprep.mubr.msk.f32.mxu0 %vm368_vm0, %v2490_v48 }
  0xb7   : > { %1767 = vmatmul.mubr.msk.f32.gmra.mrb[30].mxu0 %vm368_vm0, %v2497_v49 }
 0x14e   : > { %v1723_v57 = vpop.f32.mrb[0].mxu0 }
 0x14f   : > { %v698_v59 = vmul.f32 %v1723_v57, %v2504_v56  ;;  %v531_v60 = vpop.f32.mrb[1].mxu0 }
 0x150   : > { %v697_v61 = vmul.f32 %v2504_v56, %v531_v60 }
 0x151   : > { %v737_v62 = vadd.f32 %v2509_v58, %v698_v59 }
 0x152   : > { %v1726_v63 = vpop.f32.mrb[2].mxu0  ;;  %v736_v0 = vadd.f32 %v2509_v58, %v697_v61 }
 0x153   : > { %v700_v1 = vmul.f32 %v1726_v63, %v2504_v56  ;;  %v541_v2 = vpop.f32.mrb[3].mxu0  ;;  %v769_v5 = vmax.f32 %v737_v62, 0.0 }
 0x154   : > { %v699_v3 = vmul.f32 %v2504_v56, %v541_v2  ;;  %v768_v4 = vmax.f32 %v736_v0, 0.0 }
 0x155   : > { %v739_v6 = vadd.f32 %v2509_v58, %v700_v1 }
 0x156   : > { %v738_v7 = vadd.f32 %v2509_v58, %v699_v3  ;;  %v1729_v9 = vpop.f32.mrb[4].mxu0  ;;  %1785 = vmatprep.mubr.msk.f32.mxu1 %vm368_vm0, %v768_v4 }
 0x157   : > { %v702_v10 = vmul.f32 %v1729_v9, %v2504_v56  ;;  %v551_v11 = vpop.f32.mrb[5].mxu0  ;;  %1786 = vmatmul.mubr.msk.f32.vlgmr.msra.gmra.mrb[0].mxu1 %vm368_vm0, %v769_v5  ;;  %v771_v14 = vmax.f32 %v739_v6, 0.0 }
 0x158   : > { %v770_v12 = vmax.f32 %v738_v7, 0.0  ;;  %v701_v13 = vmul.f32 %v2504_v56, %v551_v11 }
 0x159   : > { %v741_v15 = vadd.f32 %v2509_v58, %v702_v10 }
 0x15a   : > { %v740_v16 = vadd.f32 %v2509_v58, %v701_v13  ;;  %v1732_v17 = vpop.f32.mrb[6].mxu0  ;;  %1788 = vmatprep.mubr.msk.f32.mxu1 %vm368_vm0, %v770_v12 }
 0x15b   : > { %v773_v18 = vmax.f32 %v741_v15, 0.0  ;;  %v704_v50 = vmul.f32 %v1732_v17, %v2504_v56  ;;  %v561_v51 = vpop.f32.mrb[7].mxu0  ;;  %1789 = vmatmul.mubr.msk.f32.gmra.mrb[2].mxu1 %vm368_vm0, %v771_v14 }
 0x15c   : > { %v772_v52 = vmax.f32 %v740_v16, 0.0  ;;  %v703_v53 = vmul.f32 %v2504_v56, %v561_v51 }
 0x15d   : > { %v743_v54 = vadd.f32 %v2509_v58, %v704_v50 }
 0x15e   : > { %v742_v55 = vadd.f32 %v2509_v58, %v703_v53  ;;  %v1735_v57 = vpop.f32.mrb[8].mxu0  ;;  %1791 = vmatprep.mubr.msk.f32.mxu1 %vm368_vm0, %v772_v52 }
 0x15f   : > { %v775_v59 = vmax.f32 %v743_v54, 0.0  ;;  %v706_v60 = vmul.f32 %v1735_v57, %v2504_v56  ;;  %v571_v61 = vpop.f32.mrb[9].mxu0  ;;  %1792 = vmatmul.mubr.msk.f32.gmra.mrb[4].mxu1 %vm368_vm0, %v773_v18 }
 0x160   : > { %v774_v62 = vmax.f32 %v742_v55, 0.0  ;;  %v705_v63 = vmul.f32 %v2504_v56, %v571_v61 }
 0x161   : > { %v745_v0 = vadd.f32 %v2509_v58, %v706_v60 }
 0x162   : > { %v744_v1 = vadd.f32 %v2509_v58, %v705_v63  ;;  %v1738_v2 = vpop.f32.mrb[10].mxu0  ;;  %1794 = vmatprep.mubr.msk.f32.mxu1 %vm368_vm0, %v774_v62 }
 0x163   : > { %v777_v3 = vmax.f32 %v745_v0, 0.0  ;;  %v708_v4 = vmul.f32 %v1738_v2, %v2504_v56  ;;  %v581_v5 = vpop.f32.mrb[11].mxu0  ;;  %1795 = vmatmul.mubr.msk.f32.gmra.mrb[6].mxu1 %vm368_vm0, %v775_v59 }
 0x164   : > { %v776_v6 = vmax.f32 %v744_v1, 0.0  ;;  %v707_v7 = vmul.f32 %v2504_v56, %v581_v5 }
 0x165   : > { %v747_v9 = vadd.f32 %v2509_v58, %v708_v4 }
 0x166   : > { %v746_v10 = vadd.f32 %v2509_v58, %v707_v7  ;;  %v1741_v11 = vpop.f32.mrb[12].mxu0  ;;  %1797 = vmatprep.mubr.msk.f32.mxu1 %vm368_vm0, %v776_v6 }
 0x167   : > { %v779_v12 = vmax.f32 %v747_v9, 0.0  ;;  %v710_v13 = vmul.f32 %v1741_v11, %v2504_v56  ;;  %v591_v14 = vpop.f32.mrb[13].mxu0  ;;  %1798 = vmatmul.mubr.msk.f32.gmra.mrb[8].mxu1 %vm368_vm0, %v777_v3 }
 0x168   : > { %v778_v15 = vmax.f32 %v746_v10, 0.0  ;;  %v709_v16 = vmul.f32 %v2504_v56, %v591_v14 }
 0x169   : > { %v749_v17 = vadd.f32 %v2509_v58, %v710_v13 }
 0x16a   : > { %v748_v18 = vadd.f32 %v2509_v58, %v709_v16  ;;  %v1744_v50 = vpop.f32.mrb[14].mxu0  ;;  %1800 = vmatprep.mubr.msk.f32.mxu1 %vm368_vm0, %v778_v15 }
 0x16b   : > { %v781_v51 = vmax.f32 %v749_v17, 0.0  ;;  %v712_v52 = vmul.f32 %v1744_v50, %v2504_v56  ;;  %v601_v53 = vpop.f32.mrb[15].mxu0  ;;  %1801 = vmatmul.mubr.msk.f32.gmra.mrb[10].mxu1 %vm368_vm0, %v779_v12 }
 0x16c   : > { %v780_v54 = vmax.f32 %v748_v18, 0.0  ;;  %v711_v55 = vmul.f32 %v2504_v56, %v601_v53 }
 0x16d   : > { %v751_v57 = vadd.f32 %v2509_v58, %v712_v52 }
 0x16e   : > { %v750_v59 = vadd.f32 %v2509_v58, %v711_v55  ;;  %v1747_v60 = vpop.f32.mrb[16].mxu0  ;;  %1803 = vmatprep.mubr.msk.f32.mxu1 %vm368_vm0, %v780_v54 }
 0x16f   : > { %v783_v61 = vmax.f32 %v751_v57, 0.0  ;;  %v714_v62 = vmul.f32 %v1747_v60, %v2504_v56  ;;  %v611_v63 = vpop.f32.mrb[17].mxu0  ;;  %1804 = vmatmul.mubr.msk.f32.gmra.mrb[12].mxu1 %vm368_vm0, %v781_v51 }
 0x170   : > { %v782_v0 = vmax.f32 %v750_v59, 0.0  ;;  %v713_v1 = vmul.f32 %v2504_v56, %v611_v63 }
 0x171   : > { %v753_v2 = vadd.f32 %v2509_v58, %v714_v62 }
 0x172   : > { %v752_v3 = vadd.f32 %v2509_v58, %v713_v1  ;;  %v1750_v4 = vpop.f32.mrb[18].mxu0  ;;  %1806 = vmatprep.mubr.msk.f32.mxu1 %vm368_vm0, %v782_v0 }
 0x173   : > { %v785_v5 = vmax.f32 %v753_v2, 0.0  ;;  %v716_v6 = vmul.f32 %v1750_v4, %v2504_v56  ;;  %v621_v7 = vpop.f32.mrb[19].mxu0  ;;  %1807 = vmatmul.mubr.msk.f32.gmra.mrb[14].mxu1 %vm368_vm0, %v783_v61 }
 0x174   : > { %v784_v9 = vmax.f32 %v752_v3, 0.0  ;;  %v715_v10 = vmul.f32 %v2504_v56, %v621_v7 }
 0x175   : > { %v755_v11 = vadd.f32 %v2509_v58, %v716_v6 }
 0x176   : > { %v754_v12 = vadd.f32 %v2509_v58, %v715_v10  ;;  %v1753_v13 = vpop.f32.mrb[20].mxu0  ;;  %1809 = vmatprep.mubr.msk.f32.mxu1 %vm368_vm0, %v784_v9 }
 0x177   : > { %v787_v14 = vmax.f32 %v755_v11, 0.0  ;;  %v718_v15 = vmul.f32 %v1753_v13, %v2504_v56  ;;  %v631_v16 = vpop.f32.mrb[21].mxu0  ;;  %1810 = vmatmul.mubr.msk.f32.gmra.mrb[16].mxu1 %vm368_vm0, %v785_v5 }
 0x178   : > { %v786_v17 = vmax.f32 %v754_v12, 0.0  ;;  %v717_v18 = vmul.f32 %v2504_v56, %v631_v16 }
 0x179   : > { %v757_v50 = vadd.f32 %v2509_v58, %v718_v15 }
 0x17a   : > { %v756_v51 = vadd.f32 %v2509_v58, %v717_v18  ;;  %v1756_v52 = vpop.f32.mrb[22].mxu0  ;;  %1812 = vmatprep.mubr.msk.f32.mxu1 %vm368_vm0, %v786_v17 }
 0x17b   : > { %v789_v53 = vmax.f32 %v757_v50, 0.0  ;;  %v720_v54 = vmul.f32 %v1756_v52, %v2504_v56  ;;  %v641_v55 = vpop.f32.mrb[23].mxu0  ;;  %1813 = vmatmul.mubr.msk.f32.gmra.mrb[18].mxu1 %vm368_vm0, %v787_v14 }
 0x17c   : > { %v788_v57 = vmax.f32 %v756_v51, 0.0  ;;  %v719_v59 = vmul.f32 %v2504_v56, %v641_v55 }
 0x17d   : > { %v759_v60 = vadd.f32 %v2509_v58, %v720_v54 }
 0x17e   : > { %v758_v61 = vadd.f32 %v2509_v58, %v719_v59  ;;  %v1759_v62 = vpop.f32.mrb[24].mxu0  ;;  %1815 = vmatprep.mubr.msk.f32.mxu1 %vm368_vm0, %v788_v57 }
 0x17f   : > { %v791_v63 = vmax.f32 %v759_v60, 0.0  ;;  %v722_v0 = vmul.f32 %v1759_v62, %v2504_v56  ;;  %v651_v1 = vpop.f32.mrb[25].mxu0  ;;  %1816 = vmatmul.mubr.msk.f32.gmra.mrb[20].mxu1 %vm368_vm0, %v789_v53 }
 0x180   : > { %v790_v2 = vmax.f32 %v758_v61, 0.0  ;;  %v721_v3 = vmul.f32 %v2504_v56, %v651_v1 }
 0x181   : > { %v761_v4 = vadd.f32 %v2509_v58, %v722_v0 }
 0x182   : > { %v760_v5 = vadd.f32 %v2509_v58, %v721_v3  ;;  %v1762_v6 = vpop.f32.mrb[26].mxu0  ;;  %1818 = vmatprep.mubr.msk.f32.mxu1 %vm368_vm0, %v790_v2  ;;  %v2610_v2 = vld [vmem:[%s2869_s5] ss:$0 sm:$0xff] }
 0x183   : > { %v793_v7 = vmax.f32 %v761_v4, 0.0  ;;  %v724_v9 = vmul.f32 %v1762_v6, %v2504_v56  ;;  %v661_v10 = vpop.f32.mrb[27].mxu0  ;;  %1819 = vmatmul.mubr.msk.f32.gmra.mrb[22].mxu1 %vm368_vm0, %v791_v63 }
 0x184   : > { %v792_v11 = vmax.f32 %v760_v5, 0.0  ;;  %v723_v12 = vmul.f32 %v2504_v56, %v661_v10 }
 0x185   : > { %v763_v13 = vadd.f32 %v2509_v58, %v724_v9 }
 0x186   : > { %v762_v14 = vadd.f32 %v2509_v58, %v723_v12  ;;  %v1765_v15 = vpop.f32.mrb[28].mxu0  ;;  %1821 = vmatprep.mubr.msk.f32.mxu1 %vm368_vm0, %v792_v11 }
 0x187   : > { %v795_v16 = vmax.f32 %v763_v13, 0.0  ;;  %v726_v17 = vmul.f32 %v1765_v15, %v2504_v56  ;;  %v671_v18 = vpop.f32.mrb[29].mxu0  ;;  %1822 = vmatmul.mubr.msk.f32.gmra.mrb[24].mxu1 %vm368_vm0, %v793_v7 }
 0x188   : > { %v794_v50 = vmax.f32 %v762_v14, 0.0  ;;  %v725_v51 = vmul.f32 %v2504_v56, %v671_v18 }
 0x189   : > { %v765_v52 = vadd.f32 %v2509_v58, %v726_v17 }
 0x18a   : > { %v764_v53 = vadd.f32 %v2509_v58, %v725_v51  ;;  %v1768_v54 = vpop.f32.mrb[30].mxu0  ;;  %1824 = vmatprep.mubr.msk.f32.mxu1 %vm368_vm0, %v794_v50 }
 0x18b   : > { %v797_v55 = vmax.f32 %v765_v52, 0.0  ;;  %v728_v57 = vmul.f32 %v1768_v54, %v2504_v56  ;;  %v681_v59 = vpop.f32.mrb[31].mxu0  ;;  %1825 = vmatmul.mubr.msk.f32.gmra.mrb[26].mxu1 %vm368_vm0, %v795_v16 }
 0x18c   : > { %v796_v60 = vmax.f32 %v764_v53, 0.0  ;;  %v727_v61 = vmul.f32 %v2504_v56, %v681_v59 }
 0x18d   : > { %v767_v62 = vadd.f32 %v2509_v58, %v728_v57 }
 0x18e   : > { %v766_v63 = vadd.f32 %v2509_v58, %v727_v61  ;;  %1827 = vmatprep.mubr.msk.f32.mxu1 %vm368_vm0, %v796_v60  ;;  %v2615_v58 = vld [vmem:[%s2870_s6] ss:$0 sm:$0xff] }
 0x18f   : > { %v799_v0 = vmax.f32 %v767_v62, 0.0  ;;  %1828 = vmatmul.mubr.msk.f32.gmra.mrb[28].mxu1 %vm368_vm0, %v797_v55 }
 0x190   : > { %v798_v1 = vmax.f32 %v766_v63, 0.0 }
 0x192   : > { %1830 = vmatprep.mubr.msk.f32.mxu1 %vm368_vm0, %v798_v1 }
 0x193   : > { %1831 = vmatmul.mubr.msk.f32.gmra.mrb[30].mxu1 %vm368_vm0, %v799_v0 }
 0x22a   : > { %v1787_v56 = vpop.f32.mrb[0].mxu1 }
 0x22b   : > { %v1137_v3 = vmul.f32 %v1787_v56, %v2610_v2  ;;  %v970_v4 = vpop.f32.mrb[1].mxu1 }
 0x22c   : > { %v1136_v5 = vmul.f32 %v2610_v2, %v970_v4 }
 0x22d   : > { %v1176_v6 = vadd.f32 %v2615_v58, %v1137_v3 }
 0x22e   : > { %v1790_v7 = vpop.f32.mrb[2].mxu1  ;;  %v1175_v9 = vadd.f32 %v2615_v58, %v1136_v5 }
 0x22f   : > { %v1139_v10 = vmul.f32 %v1790_v7, %v2610_v2  ;;  %v980_v11 = vpop.f32.mrb[3].mxu1  ;;  %v1208_v12 = vmax.f32 %v1176_v6, 0.0 }
 0x230   : > { %v1138_v13 = vmul.f32 %v2610_v2, %v980_v11  ;;  %v1207_v16 = vmax.f32 %v1175_v9, 0.0 }
 0x231   : > { %1273 = vrot.lane.b32.xlu0 %v1208_v12, %s2100_s21  ;;  %v1178_v14 = vadd.f32 %v2615_v58, %v1139_v10 }
 0x232   : > { %v1793_v15 = vpop.f32.mrb[4].mxu1  ;;  %v1177_v17 = vadd.f32 %v2615_v58, %v1138_v13 }
 0x233   : > { %v1141_v18 = vmul.f32 %v1793_v15, %v2610_v2  ;;  %v990_v50 = vpop.f32.mrb[5].mxu1  ;;  %v1210_v51 = vmax.f32 %v1178_v14, 0.0 }
 0x234   : > { %v1140_v52 = vmul.f32 %v2610_v2, %v990_v50  ;;  %v1209_v55 = vmax.f32 %v1177_v17, 0.0 }
 0x235   : > { %1271 = vrot.lane.b32.xlu0 %v1207_v16, %s2100_s21  ;;  %1277 = vrot.lane.b32.xlu1 %v1210_v51, %s2100_s21  ;;  %v1180_v57 = vadd.f32 %v2615_v58, %v1141_v18 }
 0x236   : > { %v1179_v53 = vadd.f32 %v2615_v58, %v1140_v52  ;;  %v1796_v54 = vpop.f32.mrb[6].mxu1 }
 0x237   : > { %v1143_v59 = vmul.f32 %v1796_v54, %v2610_v2  ;;  %v1000_v60 = vpop.f32.mrb[7].mxu1  ;;  %v1212_v1 = vmax.f32 %v1180_v57, 0.0 }
 0x238   : > { %v1211_v61 = vmax.f32 %v1179_v53, 0.0  ;;  %v1142_v62 = vmul.f32 %v2610_v2, %v1000_v60 }
 0x239   : > { %1275 = vrot.lane.b32.xlu1 %v1209_v55, %s2100_s21  ;;  %v1182_v56 = vadd.f32 %v2615_v58, %v1143_v59 }
 0x23a   : > { %v1181_v63 = vadd.f32 %v2615_v58, %v1142_v62  ;;  %1279 = vrot.lane.b32.xlu0 %v1211_v61, %s2100_s21  ;;  %v1799_v0 = vpop.f32.mrb[8].mxu1 }
 0x23b   : > { %v1145_v3 = vmul.f32 %v1799_v0, %v2610_v2  ;;  %v1010_v4 = vpop.f32.mrb[9].mxu1  ;;  %v1214_v10 = vmax.f32 %v1182_v56, 0.0 }
 0x23c   : > { %v1213_v5 = vmax.f32 %v1181_v63, 0.0  ;;  %v1144_v6 = vmul.f32 %v2610_v2, %v1010_v4 }
 0x23d   : > { %1281 = vrot.lane.b32.xlu1 %v1212_v1, %s2100_s21  ;;  %v1184_v11 = vadd.f32 %v2615_v58, %v1145_v3 }
 0x23e   : > { %v1183_v7 = vadd.f32 %v2615_v58, %v1144_v6  ;;  %1283 = vrot.lane.b32.xlu0 %v1213_v5, %s2100_s21  ;;  %v1802_v9 = vpop.f32.mrb[10].mxu1 }
 0x23f   : > { %v1147_v12 = vmul.f32 %v1802_v9, %v2610_v2  ;;  %v1020_v13 = vpop.f32.mrb[11].mxu1  ;;  %v1216_v18 = vmax.f32 %v1184_v11, 0.0 }
 0x240   : > { %v1215_v14 = vmax.f32 %v1183_v7, 0.0  ;;  %v1146_v15 = vmul.f32 %v2610_v2, %v1020_v13 }
 0x241   : > { %1285 = vrot.lane.b32.xlu1 %v1214_v10, %s2100_s21  ;;  %v1186_v50 = vadd.f32 %v2615_v58, %v1147_v12 }
 0x242   : > { %v1185_v16 = vadd.f32 %v2615_v58, %v1146_v15  ;;  %1287 = vrot.lane.b32.xlu0 %v1215_v14, %s2100_s21  ;;  %v1805_v17 = vpop.f32.mrb[12].mxu1 }
 0x243   : > { %v1149_v51 = vmul.f32 %v1805_v17, %v2610_v2  ;;  %v1030_v52 = vpop.f32.mrb[13].mxu1  ;;  %v1218_v59 = vmax.f32 %v1186_v50, 0.0 }
 0x244   : > { %v1217_v53 = vmax.f32 %v1185_v16, 0.0  ;;  %v1148_v54 = vmul.f32 %v2610_v2, %v1030_v52 }
 0x245   : > { %1289 = vrot.lane.b32.xlu1 %v1216_v18, %s2100_s21  ;;  %v1188_v60 = vadd.f32 %v2615_v58, %v1149_v51 }
 0x246   : > { %v1187_v55 = vadd.f32 %v2615_v58, %v1148_v54  ;;  %1291 = vrot.lane.b32.xlu0 %v1217_v53, %s2100_s21  ;;  %v1808_v57 = vpop.f32.mrb[14].mxu1 }
 0x247   : > { %v1151_v61 = vmul.f32 %v1808_v57, %v2610_v2  ;;  %v1040_v62 = vpop.f32.mrb[15].mxu1  ;;  %v1220_v3 = vmax.f32 %v1188_v60, 0.0 }
 0x248   : > { %v1219_v63 = vmax.f32 %v1187_v55, 0.0  ;;  %v1150_v0 = vmul.f32 %v2610_v2, %v1040_v62 }
 0x249   : > { %1293 = vrot.lane.b32.xlu1 %v1218_v59, %s2100_s21  ;;  %v1190_v4 = vadd.f32 %v2615_v58, %v1151_v61 }
 0x24a   : > { %v1189_v1 = vadd.f32 %v2615_v58, %v1150_v0  ;;  %1295 = vrot.lane.b32.xlu0 %v1219_v63, %s2100_s21  ;;  %v1811_v56 = vpop.f32.mrb[16].mxu1 }
 0x24b   : > { %v1153_v5 = vmul.f32 %v1811_v56, %v2610_v2  ;;  %v1050_v6 = vpop.f32.mrb[17].mxu1  ;;  %v1222_v12 = vmax.f32 %v1190_v4, 0.0 }
 0x24c   : > { %v1221_v7 = vmax.f32 %v1189_v1, 0.0  ;;  %v1152_v9 = vmul.f32 %v2610_v2, %v1050_v6 }
 0x24d   : > { %1297 = vrot.lane.b32.xlu1 %v1220_v3, %s2100_s21  ;;  %v1192_v13 = vadd.f32 %v2615_v58, %v1153_v5 }
 0x24e   : > { %v1191_v10 = vadd.f32 %v2615_v58, %v1152_v9  ;;  %1299 = vrot.lane.b32.xlu0 %v1221_v7, %s2100_s21  ;;  %v1814_v11 = vpop.f32.mrb[18].mxu1 }
 0x24f   : > { %v1155_v14 = vmul.f32 %v1814_v11, %v2610_v2  ;;  %v1060_v15 = vpop.f32.mrb[19].mxu1  ;;  %v1224_v51 = vmax.f32 %v1192_v13, 0.0 }
 0x250   : > { %v1223_v16 = vmax.f32 %v1191_v10, 0.0  ;;  %v1154_v17 = vmul.f32 %v2610_v2, %v1060_v15 }
 0x251   : > { %1301 = vrot.lane.b32.xlu1 %v1222_v12, %s2100_s21  ;;  %v1194_v52 = vadd.f32 %v2615_v58, %v1155_v14 }
 0x252   : > { %v1193_v18 = vadd.f32 %v2615_v58, %v1154_v17  ;;  %1303 = vrot.lane.b32.xlu0 %v1223_v16, %s2100_s21  ;;  %v1817_v50 = vpop.f32.mrb[20].mxu1 }
 0x253   : > { %v1157_v53 = vmul.f32 %v1817_v50, %v2610_v2  ;;  %v1070_v54 = vpop.f32.mrb[21].mxu1  ;;  %v1226_v61 = vmax.f32 %v1194_v52, 0.0 }
 0x254   : > { %v1225_v55 = vmax.f32 %v1193_v18, 0.0  ;;  %v1156_v57 = vmul.f32 %v2610_v2, %v1070_v54 }
 0x255   : > { %1305 = vrot.lane.b32.xlu1 %v1224_v51, %s2100_s21  ;;  %v1196_v62 = vadd.f32 %v2615_v58, %v1157_v53 }
 0x256   : > { %v1195_v59 = vadd.f32 %v2615_v58, %v1156_v57  ;;  %1307 = vrot.lane.b32.xlu0 %v1225_v55, %s2100_s21  ;;  %v1820_v60 = vpop.f32.mrb[22].mxu1 }
 0x257   : > { %v1159_v63 = vmul.f32 %v1820_v60, %v2610_v2  ;;  %v1080_v0 = vpop.f32.mrb[23].mxu1  ;;  %v1228_v5 = vmax.f32 %v1196_v62, 0.0 }
 0x258   : > { %v1227_v1 = vmax.f32 %v1195_v59, 0.0  ;;  %v1158_v56 = vmul.f32 %v2610_v2, %v1080_v0 }
 0x259   : > { %1309 = vrot.lane.b32.xlu1 %v1226_v61, %s2100_s21  ;;  %v1198_v6 = vadd.f32 %v2615_v58, %v1159_v63 }
 0x25a   : > { %v1197_v3 = vadd.f32 %v2615_v58, %v1158_v56  ;;  %1311 = vrot.lane.b32.xlu0 %v1227_v1, %s2100_s21  ;;  %v1823_v4 = vpop.f32.mrb[24].mxu1 }
 0x25b   : > { %v1161_v7 = vmul.f32 %v1823_v4, %v2610_v2  ;;  %v1090_v9 = vpop.f32.mrb[25].mxu1  ;;  %v1230_v14 = vmax.f32 %v1198_v6, 0.0 }
 0x25c   : > { %v1229_v10 = vmax.f32 %v1197_v3, 0.0  ;;  %v1160_v11 = vmul.f32 %v2610_v2, %v1090_v9 }
 0x25d   : > { %1313 = vrot.lane.b32.xlu1 %v1228_v5, %s2100_s21  ;;  %v1200_v15 = vadd.f32 %v2615_v58, %v1161_v7 }
 0x25e   : > { %v1199_v12 = vadd.f32 %v2615_v58, %v1160_v11  ;;  %1315 = vrot.lane.b32.xlu0 %v1229_v10, %s2100_s21  ;;  %v1826_v13 = vpop.f32.mrb[26].mxu1 }
 0x25f   : > { %v1163_v16 = vmul.f32 %v1826_v13, %v2610_v2  ;;  %v1100_v17 = vpop.f32.mrb[27].mxu1  ;;  %v1232_v53 = vmax.f32 %v1200_v15, 0.0 }
 0x260   : > { %v1231_v18 = vmax.f32 %v1199_v12, 0.0  ;;  %v1162_v50 = vmul.f32 %v2610_v2, %v1100_v17 }
 0x261   : > { %1317 = vrot.lane.b32.xlu1 %v1230_v14, %s2100_s21  ;;  %v1202_v54 = vadd.f32 %v2615_v58, %v1163_v16 }
 0x262   : > { %v1201_v51 = vadd.f32 %v2615_v58, %v1162_v50  ;;  %1319 = vrot.lane.b32.xlu0 %v1231_v18, %s2100_s21  ;;  %v1829_v52 = vpop.f32.mrb[28].mxu1 }
 0x263   : > { %v1165_v55 = vmul.f32 %v1829_v52, %v2610_v2  ;;  %v1110_v57 = vpop.f32.mrb[29].mxu1  ;;  %v1234_v63 = vmax.f32 %v1202_v54, 0.0 }
 0x264   : > { %v1233_v59 = vmax.f32 %v1201_v51, 0.0  ;;  %v1164_v60 = vmul.f32 %v2610_v2, %v1110_v57 }
 0x265   : > { %1321 = vrot.lane.b32.xlu1 %v1232_v53, %s2100_s21  ;;  %v1204_v0 = vadd.f32 %v2615_v58, %v1165_v55 }
 0x266   : > { %v1203_v61 = vadd.f32 %v2615_v58, %v1164_v60  ;;  %1323 = vrot.lane.b32.xlu0 %v1233_v59, %s2100_s21  ;;  %v1832_v62 = vpop.f32.mrb[30].mxu1 }
 0x267   : > { %v1167_v1 = vmul.f32 %v1832_v62, %v2610_v2  ;;  %v1120_v56 = vpop.f32.mrb[31].mxu1  ;;  %v1236_v7 = vmax.f32 %v1204_v0, 0.0 }
 0x268   : > { %v1235_v3 = vmax.f32 %v1203_v61, 0.0  ;;  %v1166_v4 = vmul.f32 %v2610_v2, %v1120_v56 }
 0x269   : > { %v1206_v5 = vadd.f32 %v2615_v58, %v1167_v1  ;;  %1325 = vrot.lane.b32.xlu1 %v1234_v63, %s2100_s21 }
 0x26a   : > { %v1205_v6 = vadd.f32 %v2615_v58, %v1166_v4  ;;  %1327 = vrot.lane.b32.xlu0 %v1235_v3, %s2100_s21 }
 0x26b   : > { %v1238_v10 = vmax.f32 %v1206_v5, 0.0 }
 0x26c   : > { %v1237_v9 = vmax.f32 %v1205_v6, 0.0 }
 0x26d   : > { %1329 = vrot.lane.b32.xlu1 %v1236_v7, %s2100_s21 }
 0x26e   : > { %1331 = vrot.lane.b32.xlu0 %v1237_v9, %s2100_s21 }
 0x271   : > { %1333 = vrot.lane.b32.xlu1 %v1238_v10, %s2100_s21 }
 0x2a3   : > { %v1274_v11 = vpop.permute.xlu0 %1273 }
 0x2a4   : > { %v1368_v2 = vsel %vm368_vm0, %v2347_v19, %v1274_v11 }
 0x2a5   : > { %1400 = vst [vmem:[%s2717_s23 + $0x8] sm:$0xff] %v1368_v2 }
 0x2a7   : > { %v1272_v58 = vpop.permute.xlu0 %1271  ;;  %v1278_v12 = vpop.permute.xlu1 %1277 }
 0x2a8   : > { %v1367_v13 = vsel %vm368_vm0, %v2342_v8, %v1272_v58  ;;  %v1370_v14 = vsel %vm368_vm0, %v2357_v21, %v1278_v12 }
 0x2a9   : > { %1399 = vst [vmem:[%s2717_s23] sm:$0xff] %v1367_v13  ;;  %1402 = vst [vmem:[%s2717_s23 + $0x18] sm:$0xff] %v1370_v14 }
 0x2ab   : > { %v1276_v19 = vpop.permute.xlu1 %1275 }
 0x2ac   : > { %v1369_v15 = vsel %vm368_vm0, %v2350_v20, %v1276_v19  ;;  %v1280_v16 = vpop.permute.xlu0 %1279 }
 0x2ad   : > { %1401 = vst [vmem:[%s2717_s23 + $0x10] sm:$0xff] %v1369_v15  ;;  %v1371_v17 = vsel %vm368_vm0, %v2360_v22, %v1280_v16 }
 0x2ae   : > { %1403 = vst [vmem:[%s2717_s23 + $0x20] sm:$0xff] %v1371_v17 }
 0x2af   : > { %v1282_v18 = vpop.permute.xlu1 %1281 }
 0x2b0   : > { %v1372_v8 = vsel %vm368_vm0, %v2367_v23, %v1282_v18  ;;  %v1284_v21 = vpop.permute.xlu0 %1283 }
 0x2b1   : > { %1404 = vst [vmem:[%s2717_s23 + $0x28] sm:$0xff] %v1372_v8  ;;  %v1373_v50 = vsel %vm368_vm0, %v2370_v24, %v1284_v21 }
 0x2b2   : > { %1405 = vst [vmem:[%s2717_s23 + $0x30] sm:$0xff] %v1373_v50 }
 0x2b3   : > { %v1286_v20 = vpop.permute.xlu1 %1285 }
 0x2b4   : > { %v1374_v51 = vsel %vm368_vm0, %v2377_v25, %v1286_v20  ;;  %v1288_v22 = vpop.permute.xlu0 %1287 }
 0x2b5   : > { %1406 = vst [vmem:[%s2717_s23 + $0x38] sm:$0xff] %v1374_v51  ;;  %v1375_v52 = vsel %vm368_vm0, %v2380_v26, %v1288_v22 }
 0x2b6   : > { %1407 = vst [vmem:[%s2717_s23 + $0x40] sm:$0xff] %v1375_v52 }
 0x2b7   : > { %v1290_v23 = vpop.permute.xlu1 %1289 }
 0x2b8   : > { %v1376_v53 = vsel %vm368_vm0, %v2387_v27, %v1290_v23  ;;  %v1292_v24 = vpop.permute.xlu0 %1291 }
 0x2b9   : > { %1408 = vst [vmem:[%s2717_s23 + $0x48] sm:$0xff] %v1376_v53  ;;  %v1377_v54 = vsel %vm368_vm0, %v2390_v28, %v1292_v24 }
 0x2ba   : > { %1409 = vst [vmem:[%s2717_s23 + $0x50] sm:$0xff] %v1377_v54 }
 0x2bb   : > { %v1294_v25 = vpop.permute.xlu1 %1293 }
 0x2bc   : > { %v1378_v55 = vsel %vm368_vm0, %v2397_v29, %v1294_v25  ;;  %v1296_v26 = vpop.permute.xlu0 %1295 }
 0x2bd   : > { %1410 = vst [vmem:[%s2717_s23 + $0x58] sm:$0xff] %v1378_v55  ;;  %v1379_v57 = vsel %vm368_vm0, %v2400_v30, %v1296_v26 }
 0x2be   : > { %1411 = vst [vmem:[%s2717_s23 + $0x60] sm:$0xff] %v1379_v57 }
 0x2bf   : > { %v1298_v27 = vpop.permute.xlu1 %1297 }
 0x2c0   : > { %v1380_v59 = vsel %vm368_vm0, %v2407_v31, %v1298_v27  ;;  %v1300_v28 = vpop.permute.xlu0 %1299 }
 0x2c1   : > { %1412 = vst [vmem:[%s2717_s23 + $0x68] sm:$0xff] %v1380_v59  ;;  %v1381_v60 = vsel %vm368_vm0, %v2410_v32, %v1300_v28 }
 0x2c2   : > { %1413 = vst [vmem:[%s2717_s23 + $0x70] sm:$0xff] %v1381_v60 }
 0x2c3   : > { %v1302_v29 = vpop.permute.xlu1 %1301 }
 0x2c4   : > { %v1382_v61 = vsel %vm368_vm0, %v2417_v33, %v1302_v29  ;;  %v1304_v30 = vpop.permute.xlu0 %1303 }
 0x2c5   : > { %1414 = vst [vmem:[%s2717_s23 + $0x78] sm:$0xff] %v1382_v61  ;;  %v1383_v62 = vsel %vm368_vm0, %v2420_v34, %v1304_v30 }
 0x2c6   : > { %1415 = vst [vmem:[%s2717_s23 + $0x80] sm:$0xff] %v1383_v62 }
 0x2c7   : > { %v1306_v31 = vpop.permute.xlu1 %1305 }
 0x2c8   : > { %v1384_v63 = vsel %vm368_vm0, %v2427_v35, %v1306_v31  ;;  %v1308_v32 = vpop.permute.xlu0 %1307 }
 0x2c9   : > { %1416 = vst [vmem:[%s2717_s23 + $0x88] sm:$0xff] %v1384_v63  ;;  %v1385_v0 = vsel %vm368_vm0, %v2430_v36, %v1308_v32 }
 0x2ca   : > { %1417 = vst [vmem:[%s2717_s23 + $0x90] sm:$0xff] %v1385_v0 }
 0x2cb   : > { %v1310_v33 = vpop.permute.xlu1 %1309 }
 0x2cc   : > { %v1386_v1 = vsel %vm368_vm0, %v2437_v37, %v1310_v33  ;;  %v1312_v34 = vpop.permute.xlu0 %1311 }
 0x2cd   : > { %1418 = vst [vmem:[%s2717_s23 + $0x98] sm:$0xff] %v1386_v1  ;;  %v1387_v56 = vsel %vm368_vm0, %v2440_v38, %v1312_v34 }
 0x2ce   : > { %1419 = vst [vmem:[%s2717_s23 + $0xa0] sm:$0xff] %v1387_v56 }
 0x2cf   : > { %v1314_v35 = vpop.permute.xlu1 %1313 }
 0x2d0   : > { %v1388_v3 = vsel %vm368_vm0, %v2447_v39, %v1314_v35  ;;  %v1316_v36 = vpop.permute.xlu0 %1315 }
 0x2d1   : > { %1420 = vst [vmem:[%s2717_s23 + $0xa8] sm:$0xff] %v1388_v3  ;;  %v1389_v4 = vsel %vm368_vm0, %v2450_v40, %v1316_v36 }
 0x2d2   : > { %1421 = vst [vmem:[%s2717_s23 + $0xb0] sm:$0xff] %v1389_v4 }
 0x2d3   : > { %v1318_v37 = vpop.permute.xlu1 %1317 }
 0x2d4   : > { %v1390_v5 = vsel %vm368_vm0, %v2457_v41, %v1318_v37  ;;  %v1320_v38 = vpop.permute.xlu0 %1319 }
 0x2d5   : > { %1422 = vst [vmem:[%s2717_s23 + $0xb8] sm:$0xff] %v1390_v5  ;;  %v1391_v6 = vsel %vm368_vm0, %v2460_v42, %v1320_v38 }
 0x2d6   : > { %1423 = vst [vmem:[%s2717_s23 + $0xc0] sm:$0xff] %v1391_v6 }
 0x2d7   : > { %v1322_v39 = vpop.permute.xlu1 %1321 }
 0x2d8   : > { %v1392_v7 = vsel %vm368_vm0, %v2467_v43, %v1322_v39  ;;  %v1324_v40 = vpop.permute.xlu0 %1323 }
 0x2d9   : > { %1424 = vst [vmem:[%s2717_s23 + $0xc8] sm:$0xff] %v1392_v7  ;;  %v1393_v41 = vsel %vm368_vm0, %v2470_v44, %v1324_v40 }
 0x2da   : > { %1425 = vst [vmem:[%s2717_s23 + $0xd0] sm:$0xff] %v1393_v41 }
 0x2db   : > { %v1326_v9 = vpop.permute.xlu1 %1325 }
 0x2dc   : > { %v1394_v10 = vsel %vm368_vm0, %v2477_v45, %v1326_v9  ;;  %v1328_v11 = vpop.permute.xlu0 %1327 }
 0x2dd   : > { %1426 = vst [vmem:[%s2717_s23 + $0xd8] sm:$0xff] %v1394_v10  ;;  %v1395_v42 = vsel %vm368_vm0, %v2480_v46, %v1328_v11 }
 0x2de   : > { %1427 = vst [vmem:[%s2717_s23 + $0xe0] sm:$0xff] %v1395_v42 }
 0x2df   : > { %v1330_v43 = vpop.permute.xlu1 %1329 }
 0x2e0   : > { %v1396_v44 = vsel %vm368_vm0, %v2487_v47, %v1330_v43  ;;  %v1332_v2 = vpop.permute.xlu0 %1331 }
 0x2e1   : > { %1428 = vst [vmem:[%s2717_s23 + $0xe8] sm:$0xff] %v1396_v44  ;;  %v1397_v45 = vsel %vm368_vm0, %v2490_v48, %v1332_v2 }
 0x2e2   : > { %1429 = vst [vmem:[%s2717_s23 + $0xf0] sm:$0xff] %v1397_v45 }
 0x2e3   : > { %v1334_v46 = vpop.permute.xlu1 %1333 }
 0x2e4   : > { %v1398_v47 = vsel %vm368_vm0, %v2497_v49, %v1334_v46 }
 0x2e5   : > { %1430 = vst [vmem:[%s2717_s23 + $0xf8] sm:$0xff] %v1398_v47 }
 0x2e6   : > { %2036 = shalt.err (!%p2033_p1)
}
 0x2e7   : > { %s2037_s19 = scalar_lea.hbm %s2815_s9, 4096  ;;  %s2041_s23 = scalar_lea.hbm %s2871_s7, 8192 }
 0x2e8   : > { %p2038_p13 = scmp.ne.s32.totalorder %s2815_s9, %s2037_s19  ;;  %p2042_p4 = scmp.lt.u32.totalorder %s2815_s9, %s2871_s7 }
 0x2e9   : > { %p2043_p5 = scmp.lt.u32.totalorder %s2041_s23, %s2037_s19  ;;  %p2045_p11 = scmp.lt.u32.totalorder %s2037_s19, %s2815_s9 }
 0x2ea   : > { %p2039_p6 = pnand %p2038_p13, %p2887_p0 }
 0x2eb   : > { %p2044_p8 = por %p2043_p5, %p2042_p4 }
 0x2ec   : > { %p2040_p10 = pneg %p2039_p6 }
 0x2ed   : > { %p2046_p2 = por %p2045_p11, %p2044_p8 }
 0x2ef   : > { %p2047_p3 = pnand %p2046_p2, %p2040_p10 }
 0x2f1   : > { %2050 = shalt.err (!%p2047_p3)
}
 0x2f2   : > { %s2102_s30 = smov 128   ;;  %s2103_s29 = smov 8  }
 0x2f3   : > { %1875 = dma.vmem_to_hbm [thread:$0]  (%p2887_p0), %s2817_s18, 4096, %s2815_s9, %s1432_s28, %s2102_s30, %s2102_s30, %s2103_s29  }
 0x2f4 PF: > { %s1460_s11 = sand.u32 1, %s2081_s24   ;;  %p2888_p7 = scmp.ne.s32.totalorder %s2877_s8, 0 }
 0x2f5   : > { %p2889_p9 = scmp.ge.s32.totalorder %s2093_s27, 2  ;;  %s1461_s10 = scalar_lea.sflag [#allocation4], %s1460_s11 }
 0x2f7   : > { %p1889_p12 = pnand %p2889_p9, %p2888_p7 }
 0x2f9   : > { %2076 = dma.done.wait (!%p1889_p12), %s1461_s10, 4096  }
 0x2fa   : > { %2078 = vsyncadd (!%p1889_p12), %s1461_s10, 4294963200  ;;  %p21_p1 = scmp.ge.s32.totalorder %s2260_s12, 4   ;;  %s2890_s24 = smov %s2085_s25 }
 0x2fb   : > { %s2891_s25 = smov %s2089_s26  ;;  %s2892_s26 = smov %s2276_s17 }
 0x2fc   : > { %s2893_s27 = smov %s2260_s12  ;;  %23 = sbr.rel (!%p21_p1) target bundleno = 6 (0x6), region = 101 }
 0x303   :  { %1466 = vsyncpa [#allocation3], 1 }
 0x304   :  { %1468 = vsyncpa [#allocation3 + $0x1], 1 }
 0x305   :  { %1469 = vsyncpa [#allocation6], 1 }
 0x306   :  { %1470 = vsyncpa [#allocation4], 1 }
 0x307   :  { %1472 = vsyncpa [#allocation4 + $0x1], 1 }

</bundles_post_ra>
